<compile_context>
chip_gen: v5e
topology: v5e:2x2
jax: 0.10.0
libtpu: 0.0.40
codegen_flags: <defaults>
</compile_context>

<pallas_src>
import math

import jax
import jax.numpy as jnp
from jax import lax
from jax.experimental import pallas as pl
from jax.experimental.pallas import tpu as pltpu


EMB_DIM = 32          # each sub-embedding is 32 -> concat = 64 = Linear in_features
NUM_RADIUS = 64       # radius buckets (radius / 5.0)
NUM_ANGLES = 48       # 360 / 7.5 discrete angle bins
K_PAD = 128           # stacked-table rows, padded to a full lane width
A_PAD_MULT = 8        # pad output columns to a multiple of 8 (sublane-legal)
NEG_BIAS = -1e30      # bias for padded logit columns -> exp() == 0 in softmax
MAX_TILE_B = 8192     # batch tile cap (multiple of 8; ~6 MiB working set)


def _round_up(n, m):
    return ((n + m - 1) // m) * m


def _goal_kernel(idx_ref, tab_ref, out_ref):
    """Two-hot gather (one MXU pass) + log_softmax over an 8-lane-padded block.

    idx_ref: [TB, 2] int32  (col 0 = radius bucket, col 1 = NUM_RADIUS + angle bucket)
    tab_ref: [K_PAD, A_pad] f32 fused logit table (dense layer + bias pre-folded)
    out_ref: [TB, A_pad]    f32 log-softmax logits (pad cols ~ -1e30, sliced off)
    """
    tb = out_ref.shape[0]
    k = tab_ref.shape[0]

    idx = idx_ref[...]                                          # [TB, 2]
    lane_ids = lax.broadcasted_iota(jnp.int32, (tb, k), 1)      # [TB, K_PAD]
    # NOTE: padded batch rows carry idx=[0, 0]; both columns hit lane 0 and the
    # OR keeps the mask single-hot.  Do NOT replace `|` with `+`.
    twohot = ((lane_ids == idx[:, 0:1]) |
              (lane_ids == idx[:, 1:2])).astype(jnp.float32)    # [TB, K_PAD]

    # One matmul == rlogit[ridx] + tlogit[tidx]  (dense layer already folded in).
    logits = jnp.dot(twohot, tab_ref[...],
                     preferred_element_type=jnp.float32)        # [TB, A_pad]

    # log_softmax over the (8-wide) lane axis; padded columns ~-1e30 -> exp == 0.
    m = jnp.max(logits, axis=-1, keepdims=True)
    shifted = logits - m
    lse = jnp.log(jnp.sum(jnp.exp(shifted), axis=-1, keepdims=True))
    out_ref[...] = shifted - lse


def _compute_indices(agent_positions, goal_positions):
    """Scalar geometry -> (radius bucket, angle bucket), both int32 [B]."""
    agent_positions = agent_positions.astype(jnp.float32)
    goal_positions = goal_positions.astype(jnp.float32)

    dx = goal_positions[:, 0] - agent_positions[:, 0]
    dz = goal_positions[:, 1] - agent_positions[:, 1]
    pose = agent_positions[:, 2]

    radius = jnp.sqrt(dx * dx + dz * dz)
    ridx = (radius / 5.0).astype(jnp.int32)          # trunc == floor (radius >= 0)
    ridx = jnp.clip(ridx, 0, NUM_RADIUS - 1)         # nn.Embedding would error OOB

    angle = 90.0 - jnp.arctan2(dz, dx) * (180.0 / math.pi)
    diff = jnp.mod(angle - pose, 360.0)              # matches the +/-360 while loops
    tidx = (diff / 7.5).astype(jnp.int32)
    tidx = jnp.clip(tidx, 0, NUM_ANGLES - 1)
    return ridx, tidx


def make_fused_table(params):
    """Fold Linear(64, A) + bias into the tables ONCE per parameter set.

    Returns ([K_PAD, a_pad] f32 table, num_actions).  Call this outside the
    per-step forward path and reuse the result across calls.
    """
    rtab = params["radius_table"].astype(jnp.float32)            # [64, 32]
    atab = params["angle_table"].astype(jnp.float32)             # [48, 32]
    w = params["dense_w"].astype(jnp.float32)                    # [64, A]
    b = params["dense_b"].astype(jnp.float32).reshape(1, -1)     # [1, A]
    num_actions = w.shape[1]
    a_pad = _round_up(num_actions, A_PAD_MULT)

    rlogit = rtab @ w[:EMB_DIM, :] + b                           # [64, A]
    tlogit = atab @ w[EMB_DIM:, :]                               # [48, A]

    # Pad output columns: huge negative bias in the radius half so padded
    # logits are ~-1e30 and vanish in the softmax.
    rlogit = jnp.pad(rlogit, ((0, 0), (0, a_pad - num_actions)),
                     constant_values=NEG_BIAS)
    tlogit = jnp.pad(tlogit, ((0, 0), (0, a_pad - num_actions)))

    pad_rows = K_PAD - (NUM_RADIUS + NUM_ANGLES)                 # rows never selected
    tab = jnp.concatenate(
        [rlogit, tlogit, jnp.zeros((pad_rows, a_pad), jnp.float32)], axis=0)
    return tab, num_actions


def _vmem_limit_bytes(tb, a_pad):
    """Explicit scoped-VMEM budget (bytes) with 2x headroom, >= 32 MiB-safe."""
    blocks = 2 * (tb * 2 * 4)            # idx block, double-buffered
    blocks += 2 * (tb * a_pad * 4)       # out block, double-buffered
    blocks += 2 * (K_PAD * a_pad * 4)    # fused table, double-buffered
    interm = tb * K_PAD * 4              # two-hot mask
    interm += 3 * tb * a_pad * 4         # logits / shifted / exp temporaries
    budget = 2 * (blocks + interm) + (1 << 20)
    return int(min(max(budget, 32 << 20), 64 << 20))


def goal_position_forward(agent_positions, goal_positions, fused_table,
                          num_actions):
    """agent_positions: [B, 3] (x, z, pose_deg); goal_positions: [B, 2] (x, z).

    fused_table: output of make_fused_table(params) (precomputed once).
    """
    B = agent_positions.shape[0]
    a_pad = fused_table.shape[1]

    # --- cheap scalar geometry (plain JAX glue) ----------------------------
    ridx, tidx = _compute_indices(agent_positions, goal_positions)
    idx = jnp.stack([ridx, tidx + NUM_RADIUS], axis=1).astype(jnp.int32)  # [B, 2]

    # --- batch tiling: >= 2 tiles for moderate B (keeps both v7x TCs busy) --
    tb = min(MAX_TILE_B, _round_up(max(pl.cdiv(B, 2), 8), 8))
    n_tiles = pl.cdiv(B, tb)
    b_pad = n_tiles * tb
    if b_pad != B:
        idx = jnp.pad(idx, ((0, b_pad - B), (0, 0)))  # padded rows are discarded

    out_padded = pl.pallas_call(
        _goal_kernel,
        out_shape=jax.ShapeDtypeStruct((b_pad, a_pad), jnp.float32),
        grid=(n_tiles,),
        in_specs=[
            pl.BlockSpec((tb, 2), lambda i: (i, 0)),         # batch-tiled indices
            pl.BlockSpec((K_PAD, a_pad), lambda i: (0, 0)),  # VMEM-resident table
        ],
        out_specs=pl.BlockSpec((tb, a_pad), lambda i: (i, 0)),
        compiler_params=pltpu.CompilerParams(
            dimension_semantics=("parallel",),
            vmem_limit_bytes=_vmem_limit_bytes(tb, a_pad)),
    )(idx, fused_table)

    return out_padded[:B, :num_actions]


def _reference_forward(agent_positions, goal_positions, params):
    """Pure-JAX reference mirroring the PyTorch module."""
    ridx, tidx = _compute_indices(agent_positions, goal_positions)
    emb = jnp.concatenate([params["radius_table"][ridx],
                           params["angle_table"][tidx]], axis=-1)       # [B, 64]
    logits = emb @ params["dense_w"] + params["dense_b"].reshape(1, -1)
    return jax.nn.log_softmax(logits, axis=-1)


def init_params(key, num_actions):
    k1, k2, k3 = jax.random.split(key, 3)
    radius_table = jax.random.normal(k1, (NUM_RADIUS, EMB_DIM), jnp.float32) * 0.02
    angle_table = jax.random.normal(k2, (NUM_ANGLES, EMB_DIM), jnp.float32) * 0.02
    bound = 1.0 / math.sqrt(2 * EMB_DIM)
    dense_w = jax.random.uniform(k3, (2 * EMB_DIM, num_actions), jnp.float32,
                                 -bound, bound)
    dense_b = jnp.zeros((num_actions,), jnp.float32)
    return {"radius_table": radius_table, "angle_table": angle_table,
            "dense_w": dense_w, "dense_b": dense_b}


if __name__ == "__main__":
    key = jax.random.PRNGKey(0)
    kp, ka, kpose, kg = jax.random.split(key, 4)

    num_actions = 6
    batch = 4

    params = init_params(kp, num_actions)

    # Fold Linear + bias into the tables ONCE (hoisted out of forward path).
    fused_table, num_actions = make_fused_table(params)
    fused_table = jax.block_until_ready(fused_table)

    # agent: (x, z, pose_deg); goal: (x, z).  Keep coords small so radius/5 < 64.
    agent_xy = jax.random.uniform(ka, (batch, 2), jnp.float32, -20.0, 20.0)
    agent_pose = jax.random.uniform(kpose, (batch, 1), jnp.float32, 0.0, 360.0)
    agent_positions = jnp.concatenate([agent_xy, agent_pose], axis=1)   # [B, 3]
    goal_positions = jax.random.uniform(kg, (batch, 2), jnp.float32, -20.0, 20.0)

    out = goal_position_forward(agent_positions, goal_positions,
                                fused_table, num_actions)
    out = jax.block_until_ready(out)

    assert out.shape == (batch, num_actions)
    # rows of log_softmax must sum (in prob space) to ~1
    assert bool(jnp.all(jnp.abs(jnp.sum(jnp.exp(out), axis=-1) - 1.0) < 1e-4))
    # match the pure-JAX reference (embedding gather + dense + log_softmax)
    ref = _reference_forward(agent_positions, goal_positions, params)
    assert bool(jnp.all(jnp.abs(out - ref) < 1e-4))
    print("KERNEL_OK")
</pallas_src>

<mosaic_0001>
module attributes {stable_mosaic.version = 11 : i64} {
  func.func @_goal_kernel(%arg0: i32, %arg1: memref<8x2xi32, #tpu.memory_space<vmem>>, %arg2: memref<128x8xf32, #tpu.memory_space<vmem>>, %arg3: memref<8x8xf32, #tpu.memory_space<vmem>>) attributes {dimension_semantics = [#tpu.dimension_semantics<parallel>], iteration_bounds = array<i64: 1>, scalar_prefetch = 0 : i64, scratch_operands = 0 : i64, tpu.core_type = #tpu.core_type<tc>, window_params = [{transform_indices = @transform_0, window_bounds = array<i64: 8, 2>}, {pipeline_mode = #tpu.pipeline_mode<synchronous>, transform_indices = @transform_1, window_bounds = array<i64: 128, 8>}, {transform_indices = @transform_2, window_bounds = array<i64: 8, 8>}]} {
    %c0 = arith.constant 0 : index
    %c0_0 = arith.constant 0 : index
    %0 = vector.load %arg1[%c0, %c0_0] : memref<8x2xi32, #tpu.memory_space<vmem>>, vector<8x2xi32>
    %1 = tpu.iota {dimensions = array<i32: 1>} : vector<8x128xi32>
    %2 = vector.extract_strided_slice %0 {offsets = [0, 0], sizes = [8, 1], strides = [1, 1]} : vector<8x2xi32> to vector<8x1xi32>
    %3 = vector.broadcast %2 : vector<8x1xi32> to vector<8x128xi32>
    %4 = arith.cmpi eq, %1, %3 : vector<8x128xi32>
    %5 = vector.extract_strided_slice %0 {offsets = [0, 1], sizes = [8, 1], strides = [1, 1]} : vector<8x2xi32> to vector<8x1xi32>
    %6 = vector.broadcast %5 : vector<8x1xi32> to vector<8x128xi32>
    %7 = arith.cmpi eq, %1, %6 : vector<8x128xi32>
    %8 = arith.ori %4, %7 : vector<8x128xi1>
    %9 = arith.extui %8 : vector<8x128xi1> to vector<8x128xi32>
    %10 = arith.sitofp %9 : vector<8x128xi32> to vector<8x128xf32>
    %c0_1 = arith.constant 0 : index
    %c0_2 = arith.constant 0 : index
    %11 = vector.load %arg2[%c0_1, %c0_2] : memref<128x8xf32, #tpu.memory_space<vmem>>, vector<128x8xf32>
    %cst = arith.constant dense<0.000000e+00> : vector<8x8xf32>
    %12 = tpu.matmul %10, %11, %cst {dimension_numbers = #tpu.dot_dimension_numbers<[1], [0], [0], [1], [0, 0, 1, 1], [], []>} : vector<8x128xf32>, vector<128x8xf32>, vector<8x8xf32> -> vector<8x8xf32>
    %cst_3 = arith.constant dense<0xFF800000> : vector<8xf32>
    %13 = vector.multi_reduction <maximumf>, %12, %cst_3 [1] : vector<8x8xf32> to vector<8xf32>
    %14 = vector.shape_cast %13 : vector<8xf32> to vector<8x1xf32>
    %15 = vector.broadcast %14 : vector<8x1xf32> to vector<8x8xf32>
    %16 = arith.subf %12, %15 : vector<8x8xf32>
    %17 = math.exp %16 : vector<8x8xf32>
    %cst_4 = arith.constant dense<0.000000e+00> : vector<8xf32>
    %18 = vector.multi_reduction <add>, %17, %cst_4 [1] : vector<8x8xf32> to vector<8xf32>
    %19 = vector.shape_cast %18 : vector<8xf32> to vector<8x1xf32>
    %20 = math.log %19 : vector<8x1xf32>
    %21 = vector.broadcast %20 : vector<8x1xf32> to vector<8x8xf32>
    %22 = arith.subf %16, %21 : vector<8x8xf32>
    %c0_5 = arith.constant 0 : index
    %c0_6 = arith.constant 0 : index
    %23 = vector.load %arg3[%c0_5, %c0_6] : memref<8x8xf32, #tpu.memory_space<vmem>>, vector<8x8xf32>
    tpu.vector_store %arg3[%c0_5, %c0_6], %22 {strides = array<i32>} : memref<8x8xf32, #tpu.memory_space<vmem>>, vector<8x8xf32>,
    return
  }
  func.func @transform_0(%arg0: i32) -> (i32, i32) {
    %c0_i32 = arith.constant 0 : i32
    %c0_i32_0 = arith.constant 0 : i32
    return %arg0, %c0_i32 : i32, i32
  }
  func.func @transform_1(%arg0: i32) -> (i32, i32) {
    %c0_i32 = arith.constant 0 : i32
    %c0_i32_0 = arith.constant 0 : i32
    %c0_i32_1 = arith.constant 0 : i32
    return %c0_i32, %c0_i32_0 : i32, i32
  }
  func.func @transform_2(%arg0: i32) -> (i32, i32) {
    %c0_i32 = arith.constant 0 : i32
    %c0_i32_0 = arith.constant 0 : i32
    return %arg0, %c0_i32 : i32, i32
  }
}

</mosaic_0001>

<bundles_post_ra>
// kernel: tpu_custom_call.1
= control target key start
LH: loop header
LB: loop body
LE: loop exit
PB: predicated region body
PF: predicated region fallthrough
CT: control target
= control target key end

     0   :  { %v130_v3 = vmov 0   ;;  %s206_s0 = inlined_call_operand.vmem [shape: s32[8,2], index: 0, kind: input, shape index: {}]   ;;  %s207_s1 = inlined_call_operand.vmem [shape: f32[128,8], index: 1, kind: input, shape index: {}]   ;;  %s208_s2 = inlined_call_operand.hbm [shape: f32[8,8], index: 2, kind: output, shape index: {}]  }
   0x1   :  { %v12_v0 = vld [vmem:[%s206_s0] sm:$0xff]  ;;  %v41_v1 = vld [vmem:[%s207_s1 + $0x78] sm:$0xff]  ;;  %v40_v2 = vld [vmem:[%s207_s1 + $0x70] sm:$0xff]  ;;  %98 = vset.pattern.permute.xlu0 %v130_v3 }
   0x2   :  { %42 = vmatpush.msra.mxu0 %v41_v1  ;;  %16 = vperm.xlu0 %98, %v12_v0   ;;  %v39_v4 = vld [vmem:[%s207_s1 + $0x68] sm:$0xff] }
   0x4   :  { %43 = vmatpush.msra.mxu0 %v40_v2 }
   0x5   :  { %7 = vsyncpa [#allocation3], 0  ;;  %v38_v5 = vld [vmem:[%s207_s1 + $0x60] sm:$0xff]  ;;  %v37_v6 = vld [vmem:[%s207_s1 + $0x58] sm:$0xff]  ;;  %v131_v8 = vmov 1   ;;  %v13_v20 = vlaneseq  ;;  %v132_v23 = vmov 1.0  }
   0x6   :  { %44 = vmatpush.msra.mxu0 %v39_v4  ;;  %v36_v7 = vld [vmem:[%s207_s1 + $0x50] sm:$0xff]  ;;  %v35_v9 = vld [vmem:[%s207_s1 + $0x48] sm:$0xff]  ;;  %v34_v10 = vld [vmem:[%s207_s1 + $0x40] sm:$0xff]  ;;  %vm62_vm3 = vcmask 64512   ;;  %s83_s17 = sshll.u32 %s208_s2, 4  ;;  %s84_s17 = int_to_ptr.hbm [resolvable:$true] %s83_s17 }
   0x7   :  { %v33_v11 = vld [vmem:[%s207_s1 + $0x38] sm:$0xff]  ;;  %v32_v12 = vld [vmem:[%s207_s1 + $0x30] sm:$0xff]  ;;  %v31_v13 = vld [vmem:[%s207_s1 + $0x28] sm:$0xff]  ;;  %v14_v21 = vand.u32 127, %v13_v20 }
   0x8   :  { %45 = vmatpush.msra.mxu0 %v38_v5  ;;  %v30_v14 = vld [vmem:[%s207_s1 + $0x20] sm:$0xff]  ;;  %v29_v15 = vld [vmem:[%s207_s1 + $0x18] sm:$0xff]  ;;  %v28_v16 = vld [vmem:[%s207_s1 + $0x10] sm:$0xff] }
   0x9   :  { %v27_v17 = vld [vmem:[%s207_s1 + $0x8] sm:$0xff]  ;;  %v26_v18 = vld [vmem:[%s207_s1] sm:$0xff]  ;;  %s133_s1 = smov [#allocation2]  }
   0xa   :  { %46 = vmatpush.msra.mxu0 %v37_v6  ;;  %99 = vset.pattern.permute.xlu0 %v131_v8  ;;  %s81_s14 = sshll.u32 %s133_s1, 4  ;;  %s82_s14 = int_to_ptr.vmem [resolvable:$true] %s81_s14 }
   0xb   :  { %20 = vperm.xlu0 %99, %v12_v0  }
   0xc   :  { %47 = vmatpush.msra.mxu0 %v36_v7 }
   0xe   :  { %48 = vmatpush.msra.mxu0 %v35_v9 }
  0x10   :  { %49 = vmatpush.msra.mxu0 %v34_v10 }
  0x12   :  { %50 = vmatpush.msra.mxu0 %v33_v11 }
  0x14   :  { %51 = vmatpush.msra.mxu0 %v32_v12 }
  0x16   :  { %52 = vmatpush.msra.mxu0 %v31_v13 }
  0x18   :  { %53 = vmatpush.msra.mxu0 %v30_v14 }
  0x1a   :  { %54 = vmatpush.msra.mxu0 %v29_v15 }
  0x1c   :  { %55 = vmatpush.msra.mxu0 %v28_v16 }
  0x1e   :  { %56 = vmatpush.msra.mxu0 %v27_v17 }
  0x20   :  { %57 = vmatpush.msra.mxu0 %v26_v18 }
  0x74   :  { %v17_v19 = vpop.permute.xlu0 %16 }
  0x75   :  { %vm18_vm0 = vcmp.eq.s32.totalorder %v14_v21, %v17_v19 }
  0x7d   :  { %v21_v22 = vpop.permute.xlu0 %20 }
  0x7e   :  { %vm22_vm1 = vcmp.eq.s32.totalorder %v14_v21, %v21_v22 }
  0x7f   :  { %vm23_vm2 = vmor %vm18_vm0, %vm22_vm1 }
  0x80   :  { %93 = vmatmul.msk.f32.vlgmr.msra.gmra.mxu0 %vm23_vm2, %v132_v23 }
  0xfd   :  { %v59_v24 = vpop.f32.mrf.mxu0 }
  0xfe   :  { %v63_v25 = vsel %vm62_vm3, %v59_v24, -inf }
  0xff   :  { %64 = vmax.xlane.f32.xlu1 %v63_v25 }
 0x172   :  { %v65_v26 = vpop.xlane.xlu1 %64 }
 0x173   :  { %v66_v27 = vsub.f32 %v59_v24, %v65_v26 }
 0x175   :  { %v67_v28 = vmul.f32 1.442695, %v66_v27 }
 0x177   :  { %100 = vpow2.f32 %v67_v28 }
 0x17d   :  { %v101_v29 = vpop.eup %100 }
 0x17e   :  { %v69_v30 = vsel %vm62_vm3, %v101_v29, 0.0 }
 0x17f   :  { %70 = vadd.xlane.f32.xlu1 %v69_v30 }
 0x1f2   :  { %v71_v31 = vpop.xlane.xlu1 %70 }
 0x1f3   :  { %102 = vlog2.f32 %v71_v31 }
 0x1f9   :  { %v103_v32 = vpop.eup %102 }
 0x1fa   :  { %v73_v33 = vmul.f32 0.6931472, %v103_v32 }
 0x1fc   :  { %v74_v34 = vsub.f32 %v66_v27, %v73_v33 }
 0x1fe   :  { %75 = vst.msk [vmem:[#allocation2] sm:$0xff] %vm62_vm3, %v74_v34 }
 0x1ff   :  { %86 = dma.vmem_to_hbm [thread:$0]  %s82_s14, 128, %s84_s17, [#allocation3]  }
 0x200   :  { %128 = dma.done.wait [#allocation3], 128  }
 0x201   :  { %129 = vsyncadd [#allocation3], 4294967168 }
 0x202   :  { %91 = vsyncpa [#allocation3], 1 }

</bundles_post_ra>
